<compile_context>
chip_gen: v7x
topology: tpu7x:2x2x1
jax: 0.10.0
libtpu: 0.0.40
codegen_flags: <defaults>
</compile_context>

<pallas_src>
import jax
import jax.numpy as jnp
from jax.experimental import pallas as pl
from jax.experimental.pallas import tpu as pltpu


def _make_deep_lstm_kernel(t_chunk: int, batch: int, hidden: int):
    """Kernel factory; t_chunk/batch/hidden are static and baked into the trace."""
    B, H = batch, hidden

    def kernel(x_ref, wih_ref, whh_ref, b_ref, wl2_ref, bl2_ref,
               y_ref, h_scr, c_scr):
        # Zero-init carried state on the first chunk (== init_hidden()).
        @pl.when(pl.program_id(0) == 0)
        def _():
            h_scr[...] = jnp.zeros_like(h_scr)
            c_scr[...] = jnp.zeros_like(c_scr)

        # ---- Loop-invariant loads hoisted out of the recurrence (one vld each).
        whh = whh_ref[...]            # (H, 4H) f32 recurrent weights, vreg-resident
        gate_b = b_ref[...]           # (1, 4H) f32  (b_ih + b_hh)

        # ---- Hoisted input projection: one chunk-wide bf16 MXU GEMM.
        #      gx[t*B + b] = x[t, b] @ W_ih^T + (b_ih + b_hh), gate order (i,f,o,g).
        gx = jnp.dot(x_ref[0], wih_ref[...],
                     preferred_element_type=jnp.float32) + gate_b   # (T*B, 4H) f32
        # gx stays in vregs; no scratch round-trip.

        # ---- Serial recurrence: only h @ W_hh^T + gate math on the critical path.
        #      h/c and all elementwise math stay f32 (v5e has no bf16 VPU/EUP path).
        h = h_scr[...]
        c = c_scr[...]
        hs = []
        # TODO(synk): for t_chunk >~64 switch to lax.fori_loop with partial unroll
        # (unroll=8/16) + dynamic slices to bound code size / vreg live ranges.
        # TODO(synk): optionally drive the MXU with pltpu.matmul_push_rhs /
        # matmul_acc_lhs / matmul_pop to hold W_hh in the array across the chunk.
        for t in range(t_chunk):
            gates = (jnp.dot(h, whh, preferred_element_type=jnp.float32)
                     + gx[t * B:(t + 1) * B, :])                    # (B, 4H) f32
            # Gate columns were reordered wrapper-side to (i, f, o, g):
            # one contiguous sigmoid over 3H lanes + one tanh over H lanes.
            sig = jax.nn.sigmoid(gates[:, :3 * H])
            g_g = jnp.tanh(gates[:, 3 * H:])
            i_g = sig[:, 0:H]
            f_g = sig[:, H:2 * H]
            o_g = sig[:, 2 * H:3 * H]
            c = f_g * c + i_g * g_g
            h = o_g * jnp.tanh(c)
            hs.append(h)              # stays in vregs (no per-step masked vst)

        h_scr[...] = h
        c_scr[...] = c

        # ---- Hoisted output Linear: one chunk-wide bf16 GEMM + one writeback.
        h_all = jnp.concatenate(hs, axis=0).astype(wl2_ref.dtype)   # (T*B, H)
        y = jnp.dot(h_all, wl2_ref[...],
                    preferred_element_type=jnp.float32) + bl2_ref[...]
        # TODO(synk): when H < 128, a lane-dense (T*B*H/128, 128) writeback would
        # avoid masked vst; skipped (needs a minor-dim reshape), irrelevant once
        # production H >= 128.
        y_ref[0] = y.astype(y_ref.dtype)

    return kernel


def _reorder_gates(w, hidden):
    """PyTorch LSTM packs gates (i, f, g, o) along dim 0; reorder to (i, f, o, g)."""
    return w.reshape(4, hidden, *w.shape[1:])[jnp.array([0, 1, 3, 2])].reshape(w.shape)


def deep_lstm_forward(x, params, *, t_chunk=128, compute_dtype=jnp.bfloat16):
    """x: (S, B, d_in) float32.  Returns y: (S, B, d_out) float32."""
    S, B, d_in = x.shape
    H = params["w_hh"].shape[1]        # d_out
    G4 = 4 * H

    # Time chunking (pad sequence with zeros; padded outputs are dropped).
    T_CHUNK = max(1, min(int(t_chunk), S))
    S_pad = ((S + T_CHUNK - 1) // T_CHUNK) * T_CHUNK
    if S_pad != S:
        x = jnp.concatenate([x, jnp.zeros((S_pad - S, B, d_in), x.dtype)], axis=0)
    n_chunks = S_pad // T_CHUNK

    # Wrapper-side weight prep:
    #  * gate order (i,f,g,o) -> (i,f,o,g): 2 EUP pushes / 2 lane-slices per step
    #  * pre-transposed so the kernel runs plain (M,K)@(K,N) GEMMs
    #  * big hoisted-GEMM weights bf16 (native MXU); recurrent weight stays f32 so
    #    no rounding compounds in the recurrent state.
    wih_T = _reorder_gates(params["w_ih"], H).T.astype(compute_dtype)           # (d_in, 4H)
    whh_T = _reorder_gates(params["w_hh"], H).T.astype(jnp.float32)             # (H, 4H)
    b = _reorder_gates(params["b_ih"] + params["b_hh"], H).astype(jnp.float32)[None, :]
    wl2_T = params["w_l2"].T.astype(compute_dtype)                              # (H, H)
    bl2 = params["b_l2"].astype(jnp.float32)[None, :]                           # (1, H)

    # Pack time chunks so each grid step sees one 2-D (T_CHUNK*B, d_in) slab;
    # rows ordered (t, b) within a chunk (contiguous reshape).
    x_packed = x.astype(compute_dtype).reshape(n_chunks, T_CHUNK * B, d_in)

    resident = lambda shape: pl.BlockSpec(shape, lambda c: (0,) * len(shape))
    # TODO(synk): on v7x at production H, add pipeline_mode=pl.Buffered(1) to the
    # constant-index weight specs and bf16 scratch to fit the 64 MiB VMEM.

    kernel = _make_deep_lstm_kernel(T_CHUNK, B, H)

    y_packed = pl.pallas_call(
        kernel,
        out_shape=jax.ShapeDtypeStruct((n_chunks, T_CHUNK * B, H), jnp.float32),
        grid_spec=pltpu.PrefetchScalarGridSpec(
            num_scalar_prefetch=0,
            grid=(n_chunks,),
            in_specs=[
                pl.BlockSpec((1, T_CHUNK * B, d_in), lambda c: (c, 0, 0)),  # x chunk
                resident((d_in, G4)),                                       # W_ih^T (bf16)
                resident((H, G4)),                                          # W_hh^T (f32)
                resident((1, G4)),                                          # b_ih+b_hh
                resident((H, H)),                                           # W_l2^T (bf16)
                resident((1, H)),                                           # b_l2
            ],
            out_specs=pl.BlockSpec((1, T_CHUNK * B, H), lambda c: (c, 0, 0)),
            scratch_shapes=[
                pltpu.VMEM((B, H), jnp.float32),   # h carry (persists across chunks)
                pltpu.VMEM((B, H), jnp.float32),   # c carry
            ],
        ),
        compiler_params=pltpu.CompilerParams(
            dimension_semantics=("arbitrary",),    # time recurrence is serial
            vmem_limit_bytes=32 * 1024 * 1024,     # explicit headroom (v5e / v7x)
        ),
        # TODO(synk): on v7x with B > 1, add a leading "parallel" batch grid axis so
        # the second TensorCore is not idle (time stays "arbitrary").
    )(x_packed, wih_T, whh_T, b, wl2_T, bl2)

    # Contiguous reshape back to (S, B, H); drop time padding.
    return y_packed.reshape(S_pad, B, H)[:S]


def deep_lstm_reference(x, params):
    """Pure-JAX f32 reference matching PyTorch nn.LSTM + nn.Linear semantics."""
    S, B, d_in = x.shape
    H = params["w_hh"].shape[1]
    h = jnp.zeros((B, H), jnp.float32)
    c = jnp.zeros((B, H), jnp.float32)
    b = params["b_ih"] + params["b_hh"]

    def step(carry, x_t):
        h, c = carry
        gates = x_t @ params["w_ih"].T + h @ params["w_hh"].T + b
        i = jax.nn.sigmoid(gates[:, 0:H])
        f = jax.nn.sigmoid(gates[:, H:2 * H])
        g = jnp.tanh(gates[:, 2 * H:3 * H])
        o = jax.nn.sigmoid(gates[:, 3 * H:4 * H])
        c = f * c + i * g
        h = o * jnp.tanh(c)
        y = h @ params["w_l2"].T + params["b_l2"]
        return (h, c), y

    _, y = jax.lax.scan(step, (h, c), x)
    return y


def init_params(key, d_in, d_out):
    """Deterministic synthetic init (shapes match nn.LSTM / nn.Linear params)."""
    ks = jax.random.split(key, 6)
    s = 1.0 / jnp.sqrt(jnp.float32(d_out))
    u = lambda k, shape: jax.random.uniform(k, shape, jnp.float32, -s, s)
    return {
        "w_ih": u(ks[0], (4 * d_out, d_in)),   # weight_ih_l0
        "w_hh": u(ks[1], (4 * d_out, d_out)),  # weight_hh_l0
        "b_ih": u(ks[2], (4 * d_out,)),        # bias_ih_l0
        "b_hh": u(ks[3], (4 * d_out,)),        # bias_hh_l0
        "w_l2": u(ks[4], (d_out, d_out)),      # l2.weight
        "b_l2": u(ks[5], (d_out,)),            # l2.bias
    }


if __name__ == "__main__":
    d_in, d_out = 16, 32
    seq, batch = 8, 1  # batch=1 is implied by init_hidden() -> (1, 1, hidden_dim)

    key = jax.random.PRNGKey(0)
    kx, kp = jax.random.split(key)
    x = jax.random.normal(kx, (seq, batch, d_in), jnp.float32)
    params = init_params(kp, d_in, d_out)

    fwd = jax.jit(lambda xx: deep_lstm_forward(xx, params))
    y = jax.block_until_ready(fwd(x))

    y_ref = jax.block_until_ready(deep_lstm_reference(x, params))
    assert y.shape == (seq, batch, d_out)
    max_err = float(jnp.max(jnp.abs(y - y_ref)))
    # bf16 operands only on the two hoisted GEMMs (recurrence is f32) => ~1e-3 error.
    assert max_err < 2e-2, f"mismatch vs reference: max abs err {max_err}"

    print("KERNEL_OK")
</pallas_src>

<mosaic_0001>
module attributes {stable_mosaic.version = 11 : i64} {
  func.func @kernel(%arg0: i32, %arg1: memref<1x8x16xbf16, #tpu.memory_space<vmem>>, %arg2: memref<16x128xbf16, #tpu.memory_space<vmem>>, %arg3: memref<32x128xf32, #tpu.memory_space<vmem>>, %arg4: memref<1x128xf32, #tpu.memory_space<vmem>>, %arg5: memref<32x32xbf16, #tpu.memory_space<vmem>>, %arg6: memref<1x32xf32, #tpu.memory_space<vmem>>, %arg7: memref<1x8x32xf32, #tpu.memory_space<vmem>>, %arg8: memref<1x32xf32, #tpu.memory_space<vmem>>, %arg9: memref<1x32xf32, #tpu.memory_space<vmem>>) attributes {dimension_semantics = [#tpu.dimension_semantics<arbitrary>], iteration_bounds = array<i64: 1>, scalar_prefetch = 0 : i64, scratch_operands = 2 : i64, tpu.core_type = #tpu.core_type<tc>, window_params = [{transform_indices = @transform_0, window_bounds = array<i64: 1, 8, 16>}, {pipeline_mode = #tpu.pipeline_mode<synchronous>, transform_indices = @transform_1, window_bounds = array<i64: 16, 128>}, {pipeline_mode = #tpu.pipeline_mode<synchronous>, transform_indices = @transform_2, window_bounds = array<i64: 32, 128>}, {pipeline_mode = #tpu.pipeline_mode<synchronous>, transform_indices = @transform_3, window_bounds = array<i64: 1, 128>}, {pipeline_mode = #tpu.pipeline_mode<synchronous>, transform_indices = @transform_4, window_bounds = array<i64: 32, 32>}, {pipeline_mode = #tpu.pipeline_mode<synchronous>, transform_indices = @transform_5, window_bounds = array<i64: 1, 32>}, {transform_indices = @transform_6, window_bounds = array<i64: 1, 8, 32>}]} {
    %c0_i32 = arith.constant 0 : i32
    %0 = arith.cmpi eq, %arg0, %c0_i32 : i32
    %1 = arith.extui %0 : i1 to i32
    %c0_i32_0 = arith.constant 0 : i32
    %2 = arith.cmpi ne, %1, %c0_i32_0 : i32
    scf.if %2 {
      %cst_41 = arith.constant 0.000000e+00 : f32
      %177 = vector.broadcast %cst_41 : f32 to vector<1x32xf32>
      %c0_42 = arith.constant 0 : index
      %c0_43 = arith.constant 0 : index
      %178 = vector.load %arg8[%c0_42, %c0_43] : memref<1x32xf32, #tpu.memory_space<vmem>>, vector<1x32xf32>
      tpu.vector_store %arg8[%c0_42, %c0_43], %177 {strides = array<i32>} : memref<1x32xf32, #tpu.memory_space<vmem>>, vector<1x32xf32>,
      %cst_44 = arith.constant 0.000000e+00 : f32
      %179 = vector.broadcast %cst_44 : f32 to vector<1x32xf32>
      %c0_45 = arith.constant 0 : index
      %c0_46 = arith.constant 0 : index
      %180 = vector.load %arg9[%c0_45, %c0_46] : memref<1x32xf32, #tpu.memory_space<vmem>>, vector<1x32xf32>
      tpu.vector_store %arg9[%c0_45, %c0_46], %179 {strides = array<i32>} : memref<1x32xf32, #tpu.memory_space<vmem>>, vector<1x32xf32>,
    } else {
    }
    %c0 = arith.constant 0 : index
    %c0_1 = arith.constant 0 : index
    %3 = vector.load %arg3[%c0, %c0_1] : memref<32x128xf32, #tpu.memory_space<vmem>>, vector<32x128xf32>
    %c0_2 = arith.constant 0 : index
    %c0_3 = arith.constant 0 : index
    %4 = vector.load %arg4[%c0_2, %c0_3] : memref<1x128xf32, #tpu.memory_space<vmem>>, vector<1x128xf32>
    %c0_4 = arith.constant 0 : index
    %c0_5 = arith.constant 0 : index
    %c0_6 = arith.constant 0 : index
    %5 = vector.load %arg1[%c0_4, %c0_5, %c0_6] : memref<1x8x16xbf16, #tpu.memory_space<vmem>>, vector<1x8x16xbf16>
    %6 = vector.shape_cast %5 : vector<1x8x16xbf16> to vector<8x16xbf16>
    %c0_7 = arith.constant 0 : index
    %c0_8 = arith.constant 0 : index
    %7 = vector.load %arg2[%c0_7, %c0_8] : memref<16x128xbf16, #tpu.memory_space<vmem>>, vector<16x128xbf16>
    %cst = arith.constant dense<0.000000e+00> : vector<8x128xf32>
    %8 = tpu.matmul %6, %7, %cst {dimension_numbers = #tpu.dot_dimension_numbers<[1], [0], [0], [1], [0, 0, 1, 1], [], []>} : vector<8x16xbf16>, vector<16x128xbf16>, vector<8x128xf32> -> vector<8x128xf32>
    %9 = vector.broadcast %4 : vector<1x128xf32> to vector<8x128xf32>
    %10 = arith.addf %8, %9 : vector<8x128xf32>
    %c0_9 = arith.constant 0 : index
    %c0_10 = arith.constant 0 : index
    %11 = vector.load %arg8[%c0_9, %c0_10] : memref<1x32xf32, #tpu.memory_space<vmem>>, vector<1x32xf32>
    %c0_11 = arith.constant 0 : index
    %c0_12 = arith.constant 0 : index
    %12 = vector.load %arg9[%c0_11, %c0_12] : memref<1x32xf32, #tpu.memory_space<vmem>>, vector<1x32xf32>
    %cst_13 = arith.constant dense<0.000000e+00> : vector<1x128xf32>
    %13 = tpu.matmul %11, %3, %cst_13 {dimension_numbers = #tpu.dot_dimension_numbers<[1], [0], [0], [1], [0, 0, 1, 1], [], []>} : vector<1x32xf32>, vector<32x128xf32>, vector<1x128xf32> -> vector<1x128xf32>
    %14 = vector.extract_strided_slice %10 {offsets = [0, 0], sizes = [1, 128], strides = [1, 1]} : vector<8x128xf32> to vector<1x128xf32>
    %15 = arith.addf %13, %14 : vector<1x128xf32>
    %16 = vector.extract_strided_slice %15 {offsets = [0, 0], sizes = [1, 96], strides = [1, 1]} : vector<1x128xf32> to vector<1x96xf32>
    %17 = arith.negf %16 : vector<1x96xf32>
    %18 = math.exp %17 : vector<1x96xf32>
    %cst_14 = arith.constant 1.000000e+00 : f32
    %19 = vector.broadcast %cst_14 : f32 to vector<1x96xf32>
    %20 = arith.addf %19, %18 : vector<1x96xf32>
    %21 = arith.divf %19, %20 : vector<1x96xf32>
    %22 = vector.extract_strided_slice %15 {offsets = [0, 96], sizes = [1, 32], strides = [1, 1]} : vector<1x128xf32> to vector<1x32xf32>
    %23 = math.tanh %22 : vector<1x32xf32>
    %24 = vector.extract_strided_slice %21 {offsets = [0, 0], sizes = [1, 32], strides = [1, 1]} : vector<1x96xf32> to vector<1x32xf32>
    %25 = vector.extract_strided_slice %21 {offsets = [0, 32], sizes = [1, 32], strides = [1, 1]} : vector<1x96xf32> to vector<1x32xf32>
    %26 = vector.extract_strided_slice %21 {offsets = [0, 64], sizes = [1, 32], strides = [1, 1]} : vector<1x96xf32> to vector<1x32xf32>
    %27 = arith.mulf %25, %12 : vector<1x32xf32>
    %28 = arith.mulf %24, %23 : vector<1x32xf32>
    %29 = arith.addf %27, %28 : vector<1x32xf32>
    %30 = math.tanh %29 : vector<1x32xf32>
    %31 = arith.mulf %26, %30 : vector<1x32xf32>
    %cst_15 = arith.constant dense<0.000000e+00> : vector<1x128xf32>
    %32 = tpu.matmul %31, %3, %cst_15 {dimension_numbers = #tpu.dot_dimension_numbers<[1], [0], [0], [1], [0, 0, 1, 1], [], []>} : vector<1x32xf32>, vector<32x128xf32>, vector<1x128xf32> -> vector<1x128xf32>
    %33 = vector.extract_strided_slice %10 {offsets = [1, 0], sizes = [1, 128], strides = [1, 1]} : vector<8x128xf32> to vector<1x128xf32>
    %34 = arith.addf %32, %33 : vector<1x128xf32>
    %35 = vector.extract_strided_slice %34 {offsets = [0, 0], sizes = [1, 96], strides = [1, 1]} : vector<1x128xf32> to vector<1x96xf32>
    %36 = arith.negf %35 : vector<1x96xf32>
    %37 = math.exp %36 : vector<1x96xf32>
    %cst_16 = arith.constant 1.000000e+00 : f32
    %38 = vector.broadcast %cst_16 : f32 to vector<1x96xf32>
    %39 = arith.addf %38, %37 : vector<1x96xf32>
    %40 = arith.divf %38, %39 : vector<1x96xf32>
    %41 = vector.extract_strided_slice %34 {offsets = [0, 96], sizes = [1, 32], strides = [1, 1]} : vector<1x128xf32> to vector<1x32xf32>
    %42 = math.tanh %41 : vector<1x32xf32>
    %43 = vector.extract_strided_slice %40 {offsets = [0, 0], sizes = [1, 32], strides = [1, 1]} : vector<1x96xf32> to vector<1x32xf32>
    %44 = vector.extract_strided_slice %40 {offsets = [0, 32], sizes = [1, 32], strides = [1, 1]} : vector<1x96xf32> to vector<1x32xf32>
    %45 = vector.extract_strided_slice %40 {offsets = [0, 64], sizes = [1, 32], strides = [1, 1]} : vector<1x96xf32> to vector<1x32xf32>
    %46 = arith.mulf %44, %29 : vector<1x32xf32>
    %47 = arith.mulf %43, %42 : vector<1x32xf32>
    %48 = arith.addf %46, %47 : vector<1x32xf32>
    %49 = math.tanh %48 : vector<1x32xf32>
    %50 = arith.mulf %45, %49 : vector<1x32xf32>
    %cst_17 = arith.constant dense<0.000000e+00> : vector<1x128xf32>
    %51 = tpu.matmul %50, %3, %cst_17 {dimension_numbers = #tpu.dot_dimension_numbers<[1], [0], [0], [1], [0, 0, 1, 1], [], []>} : vector<1x32xf32>, vector<32x128xf32>, vector<1x128xf32> -> vector<1x128xf32>
    %52 = vector.extract_strided_slice %10 {offsets = [2, 0], sizes = [1, 128], strides = [1, 1]} : vector<8x128xf32> to vector<1x128xf32>
    %53 = arith.addf %51, %52 : vector<1x128xf32>
    %54 = vector.extract_strided_slice %53 {offsets = [0, 0], sizes = [1, 96], strides = [1, 1]} : vector<1x128xf32> to vector<1x96xf32>
    %55 = arith.negf %54 : vector<1x96xf32>
    %56 = math.exp %55 : vector<1x96xf32>
    %cst_18 = arith.constant 1.000000e+00 : f32
    %57 = vector.broadcast %cst_18 : f32 to vector<1x96xf32>
    %58 = arith.addf %57, %56 : vector<1x96xf32>
    %59 = arith.divf %57, %58 : vector<1x96xf32>
    %60 = vector.extract_strided_slice %53 {offsets = [0, 96], sizes = [1, 32], strides = [1, 1]} : vector<1x128xf32> to vector<1x32xf32>
    %61 = math.tanh %60 : vector<1x32xf32>
    %62 = vector.extract_strided_slice %59 {offsets = [0, 0], sizes = [1, 32], strides = [1, 1]} : vector<1x96xf32> to vector<1x32xf32>
    %63 = vector.extract_strided_slice %59 {offsets = [0, 32], sizes = [1, 32], strides = [1, 1]} : vector<1x96xf32> to vector<1x32xf32>
    %64 = vector.extract_strided_slice %59 {offsets = [0, 64], sizes = [1, 32], strides = [1, 1]} : vector<1x96xf32> to vector<1x32xf32>
    %65 = arith.mulf %63, %48 : vector<1x32xf32>
    %66 = arith.mulf %62, %61 : vector<1x32xf32>
    %67 = arith.addf %65, %66 : vector<1x32xf32>
    %68 = math.tanh %67 : vector<1x32xf32>
    %69 = arith.mulf %64, %68 : vector<1x32xf32>
    %cst_19 = arith.constant dense<0.000000e+00> : vector<1x128xf32>
    %70 = tpu.matmul %69, %3, %cst_19 {dimension_numbers = #tpu.dot_dimension_numbers<[1], [0], [0], [1], [0, 0, 1, 1], [], []>} : vector<1x32xf32>, vector<32x128xf32>, vector<1x128xf32> -> vector<1x128xf32>
    %71 = vector.extract_strided_slice %10 {offsets = [3, 0], sizes = [1, 128], strides = [1, 1]} : vector<8x128xf32> to vector<1x128xf32>
    %72 = arith.addf %70, %71 : vector<1x128xf32>
    %73 = vector.extract_strided_slice %72 {offsets = [0, 0], sizes = [1, 96], strides = [1, 1]} : vector<1x128xf32> to vector<1x96xf32>
    %74 = arith.negf %73 : vector<1x96xf32>
    %75 = math.exp %74 : vector<1x96xf32>
    %cst_20 = arith.constant 1.000000e+00 : f32
    %76 = vector.broadcast %cst_20 : f32 to vector<1x96xf32>
    %77 = arith.addf %76, %75 : vector<1x96xf32>
    %78 = arith.divf %76, %77 : vector<1x96xf32>
    %79 = vector.extract_strided_slice %72 {offsets = [0, 96], sizes = [1, 32], strides = [1, 1]} : vector<1x128xf32> to vector<1x32xf32>
    %80 = math.tanh %79 : vector<1x32xf32>
    %81 = vector.extract_strided_slice %78 {offsets = [0, 0], sizes = [1, 32], strides = [1, 1]} : vector<1x96xf32> to vector<1x32xf32>
    %82 = vector.extract_strided_slice %78 {offsets = [0, 32], sizes = [1, 32], strides = [1, 1]} : vector<1x96xf32> to vector<1x32xf32>
    %83 = vector.extract_strided_slice %78 {offsets = [0, 64], sizes = [1, 32], strides = [1, 1]} : vector<1x96xf32> to vector<1x32xf32>
    %84 = arith.mulf %82, %67 : vector<1x32xf32>
    %85 = arith.mulf %81, %80 : vector<1x32xf32>
    %86 = arith.addf %84, %85 : vector<1x32xf32>
    %87 = math.tanh %86 : vector<1x32xf32>
    %88 = arith.mulf %83, %87 : vector<1x32xf32>
    %cst_21 = arith.constant dense<0.000000e+00> : vector<1x128xf32>
    %89 = tpu.matmul %88, %3, %cst_21 {dimension_numbers = #tpu.dot_dimension_numbers<[1], [0], [0], [1], [0, 0, 1, 1], [], []>} : vector<1x32xf32>, vector<32x128xf32>, vector<1x128xf32> -> vector<1x128xf32>
    %90 = vector.extract_strided_slice %10 {offsets = [4, 0], sizes = [1, 128], strides = [1, 1]} : vector<8x128xf32> to vector<1x128xf32>
    %91 = arith.addf %89, %90 : vector<1x128xf32>
    %92 = vector.extract_strided_slice %91 {offsets = [0, 0], sizes = [1, 96], strides = [1, 1]} : vector<1x128xf32> to vector<1x96xf32>
    %93 = arith.negf %92 : vector<1x96xf32>
    %94 = math.exp %93 : vector<1x96xf32>
    %cst_22 = arith.constant 1.000000e+00 : f32
    %95 = vector.broadcast %cst_22 : f32 to vector<1x96xf32>
    %96 = arith.addf %95, %94 : vector<1x96xf32>
    %97 = arith.divf %95, %96 : vector<1x96xf32>
    %98 = vector.extract_strided_slice %91 {offsets = [0, 96], sizes = [1, 32], strides = [1, 1]} : vector<1x128xf32> to vector<1x32xf32>
    %99 = math.tanh %98 : vector<1x32xf32>
    %100 = vector.extract_strided_slice %97 {offsets = [0, 0], sizes = [1, 32], strides = [1, 1]} : vector<1x96xf32> to vector<1x32xf32>
    %101 = vector.extract_strided_slice %97 {offsets = [0, 32], sizes = [1, 32], strides = [1, 1]} : vector<1x96xf32> to vector<1x32xf32>
    %102 = vector.extract_strided_slice %97 {offsets = [0, 64], sizes = [1, 32], strides = [1, 1]} : vector<1x96xf32> to vector<1x32xf32>
    %103 = arith.mulf %101, %86 : vector<1x32xf32>
    %104 = arith.mulf %100, %99 : vector<1x32xf32>
    %105 = arith.addf %103, %104 : vector<1x32xf32>
    %106 = math.tanh %105 : vector<1x32xf32>
    %107 = arith.mulf %102, %106 : vector<1x32xf32>
    %cst_23 = arith.constant dense<0.000000e+00> : vector<1x128xf32>
    %108 = tpu.matmul %107, %3, %cst_23 {dimension_numbers = #tpu.dot_dimension_numbers<[1], [0], [0], [1], [0, 0, 1, 1], [], []>} : vector<1x32xf32>, vector<32x128xf32>, vector<1x128xf32> -> vector<1x128xf32>
    %109 = vector.extract_strided_slice %10 {offsets = [5, 0], sizes = [1, 128], strides = [1, 1]} : vector<8x128xf32> to vector<1x128xf32>
    %110 = arith.addf %108, %109 : vector<1x128xf32>
    %111 = vector.extract_strided_slice %110 {offsets = [0, 0], sizes = [1, 96], strides = [1, 1]} : vector<1x128xf32> to vector<1x96xf32>
    %112 = arith.negf %111 : vector<1x96xf32>
    %113 = math.exp %112 : vector<1x96xf32>
    %cst_24 = arith.constant 1.000000e+00 : f32
    %114 = vector.broadcast %cst_24 : f32 to vector<1x96xf32>
    %115 = arith.addf %114, %113 : vector<1x96xf32>
    %116 = arith.divf %114, %115 : vector<1x96xf32>
    %117 = vector.extract_strided_slice %110 {offsets = [0, 96], sizes = [1, 32], strides = [1, 1]} : vector<1x128xf32> to vector<1x32xf32>
    %118 = math.tanh %117 : vector<1x32xf32>
    %119 = vector.extract_strided_slice %116 {offsets = [0, 0], sizes = [1, 32], strides = [1, 1]} : vector<1x96xf32> to vector<1x32xf32>
    %120 = vector.extract_strided_slice %116 {offsets = [0, 32], sizes = [1, 32], strides = [1, 1]} : vector<1x96xf32> to vector<1x32xf32>
    %121 = vector.extract_strided_slice %116 {offsets = [0, 64], sizes = [1, 32], strides = [1, 1]} : vector<1x96xf32> to vector<1x32xf32>
    %122 = arith.mulf %120, %105 : vector<1x32xf32>
    %123 = arith.mulf %119, %118 : vector<1x32xf32>
    %124 = arith.addf %122, %123 : vector<1x32xf32>
    %125 = math.tanh %124 : vector<1x32xf32>
    %126 = arith.mulf %121, %125 : vector<1x32xf32>
    %cst_25 = arith.constant dense<0.000000e+00> : vector<1x128xf32>
    %127 = tpu.matmul %126, %3, %cst_25 {dimension_numbers = #tpu.dot_dimension_numbers<[1], [0], [0], [1], [0, 0, 1, 1], [], []>} : vector<1x32xf32>, vector<32x128xf32>, vector<1x128xf32> -> vector<1x128xf32>
    %128 = vector.extract_strided_slice %10 {offsets = [6, 0], sizes = [1, 128], strides = [1, 1]} : vector<8x128xf32> to vector<1x128xf32>
    %129 = arith.addf %127, %128 : vector<1x128xf32>
    %130 = vector.extract_strided_slice %129 {offsets = [0, 0], sizes = [1, 96], strides = [1, 1]} : vector<1x128xf32> to vector<1x96xf32>
    %131 = arith.negf %130 : vector<1x96xf32>
    %132 = math.exp %131 : vector<1x96xf32>
    %cst_26 = arith.constant 1.000000e+00 : f32
    %133 = vector.broadcast %cst_26 : f32 to vector<1x96xf32>
    %134 = arith.addf %133, %132 : vector<1x96xf32>
    %135 = arith.divf %133, %134 : vector<1x96xf32>
    %136 = vector.extract_strided_slice %129 {offsets = [0, 96], sizes = [1, 32], strides = [1, 1]} : vector<1x128xf32> to vector<1x32xf32>
    %137 = math.tanh %136 : vector<1x32xf32>
    %138 = vector.extract_strided_slice %135 {offsets = [0, 0], sizes = [1, 32], strides = [1, 1]} : vector<1x96xf32> to vector<1x32xf32>
    %139 = vector.extract_strided_slice %135 {offsets = [0, 32], sizes = [1, 32], strides = [1, 1]} : vector<1x96xf32> to vector<1x32xf32>
    %140 = vector.extract_strided_slice %135 {offsets = [0, 64], sizes = [1, 32], strides = [1, 1]} : vector<1x96xf32> to vector<1x32xf32>
    %141 = arith.mulf %139, %124 : vector<1x32xf32>
    %142 = arith.mulf %138, %137 : vector<1x32xf32>
    %143 = arith.addf %141, %142 : vector<1x32xf32>
    %144 = math.tanh %143 : vector<1x32xf32>
    %145 = arith.mulf %140, %144 : vector<1x32xf32>
    %cst_27 = arith.constant dense<0.000000e+00> : vector<1x128xf32>
    %146 = tpu.matmul %145, %3, %cst_27 {dimension_numbers = #tpu.dot_dimension_numbers<[1], [0], [0], [1], [0, 0, 1, 1], [], []>} : vector<1x32xf32>, vector<32x128xf32>, vector<1x128xf32> -> vector<1x128xf32>
    %147 = vector.extract_strided_slice %10 {offsets = [7, 0], sizes = [1, 128], strides = [1, 1]} : vector<8x128xf32> to vector<1x128xf32>
    %148 = arith.addf %146, %147 : vector<1x128xf32>
    %149 = vector.extract_strided_slice %148 {offsets = [0, 0], sizes = [1, 96], strides = [1, 1]} : vector<1x128xf32> to vector<1x96xf32>
    %150 = arith.negf %149 : vector<1x96xf32>
    %151 = math.exp %150 : vector<1x96xf32>
    %cst_28 = arith.constant 1.000000e+00 : f32
    %152 = vector.broadcast %cst_28 : f32 to vector<1x96xf32>
    %153 = arith.addf %152, %151 : vector<1x96xf32>
    %154 = arith.divf %152, %153 : vector<1x96xf32>
    %155 = vector.extract_strided_slice %148 {offsets = [0, 96], sizes = [1, 32], strides = [1, 1]} : vector<1x128xf32> to vector<1x32xf32>
    %156 = math.tanh %155 : vector<1x32xf32>
    %157 = vector.extract_strided_slice %154 {offsets = [0, 0], sizes = [1, 32], strides = [1, 1]} : vector<1x96xf32> to vector<1x32xf32>
    %158 = vector.extract_strided_slice %154 {offsets = [0, 32], sizes = [1, 32], strides = [1, 1]} : vector<1x96xf32> to vector<1x32xf32>
    %159 = vector.extract_strided_slice %154 {offsets = [0, 64], sizes = [1, 32], strides = [1, 1]} : vector<1x96xf32> to vector<1x32xf32>
    %160 = arith.mulf %158, %143 : vector<1x32xf32>
    %161 = arith.mulf %157, %156 : vector<1x32xf32>
    %162 = arith.addf %160, %161 : vector<1x32xf32>
    %163 = math.tanh %162 : vector<1x32xf32>
    %164 = arith.mulf %159, %163 : vector<1x32xf32>
    %c0_29 = arith.constant 0 : index
    %c0_30 = arith.constant 0 : index
    %165 = vector.load %arg8[%c0_29, %c0_30] : memref<1x32xf32, #tpu.memory_space<vmem>>, vector<1x32xf32>
    tpu.vector_store %arg8[%c0_29, %c0_30], %164 {strides = array<i32>} : memref<1x32xf32, #tpu.memory_space<vmem>>, vector<1x32xf32>,
    %c0_31 = arith.constant 0 : index
    %c0_32 = arith.constant 0 : index
    %166 = vector.load %arg9[%c0_31, %c0_32] : memref<1x32xf32, #tpu.memory_space<vmem>>, vector<1x32xf32>
    tpu.vector_store %arg9[%c0_31, %c0_32], %162 {strides = array<i32>} : memref<1x32xf32, #tpu.memory_space<vmem>>, vector<1x32xf32>,
    %167 = tpu.concatenate %31, %50, %69, %88, %107, %126, %145, %164 in 0 : vector<1x32xf32>, vector<1x32xf32>, vector<1x32xf32>, vector<1x32xf32>, vector<1x32xf32>, vector<1x32xf32>, vector<1x32xf32>, vector<1x32xf32> -> vector<8x32xf32>
    %168 = arith.truncf %167 : vector<8x32xf32> to vector<8x32xbf16>
    %c0_33 = arith.constant 0 : index
    %c0_34 = arith.constant 0 : index
    %169 = vector.load %arg5[%c0_33, %c0_34] : memref<32x32xbf16, #tpu.memory_space<vmem>>, vector<32x32xbf16>
    %cst_35 = arith.constant dense<0.000000e+00> : vector<8x32xf32>
    %170 = tpu.matmul %168, %169, %cst_35 {dimension_numbers = #tpu.dot_dimension_numbers<[1], [0], [0], [1], [0, 0, 1, 1], [], []>} : vector<8x32xbf16>, vector<32x32xbf16>, vector<8x32xf32> -> vector<8x32xf32>
    %c0_36 = arith.constant 0 : index
    %c0_37 = arith.constant 0 : index
    %171 = vector.load %arg6[%c0_36, %c0_37] : memref<1x32xf32, #tpu.memory_space<vmem>>, vector<1x32xf32>
    %172 = vector.broadcast %171 : vector<1x32xf32> to vector<8x32xf32>
    %173 = arith.addf %170, %172 : vector<8x32xf32>
    %c0_38 = arith.constant 0 : index
    %c0_39 = arith.constant 0 : index
    %c0_40 = arith.constant 0 : index
    %174 = vector.load %arg7[%c0_38, %c0_39, %c0_40] : memref<1x8x32xf32, #tpu.memory_space<vmem>>, vector<1x8x32xf32>
    %175 = vector.shape_cast %174 : vector<1x8x32xf32> to vector<8x32xf32>
    %176 = vector.shape_cast %173 : vector<8x32xf32> to vector<1x8x32xf32>
    tpu.vector_store %arg7[%c0_38, %c0_39, %c0_40], %176 {strides = array<i32>} : memref<1x8x32xf32, #tpu.memory_space<vmem>>, vector<1x8x32xf32>,
    return
  }
  func.func @transform_0(%arg0: i32) -> (i32, i32, i32) {
    %c0_i32 = arith.constant 0 : i32
    %c0_i32_0 = arith.constant 0 : i32
    %c0_i32_1 = arith.constant 0 : i32
    return %arg0, %c0_i32, %c0_i32_0 : i32, i32, i32
  }
  func.func @transform_1(%arg0: i32) -> (i32, i32) {
    %c0_i32 = arith.constant 0 : i32
    %c0_i32_0 = arith.constant 0 : i32
    %c0_i32_1 = arith.constant 0 : i32
    return %c0_i32, %c0_i32_0 : i32, i32
  }
  func.func @transform_2(%arg0: i32) -> (i32, i32) {
    %c0_i32 = arith.constant 0 : i32
    %c0_i32_0 = arith.constant 0 : i32
    %c0_i32_1 = arith.constant 0 : i32
    return %c0_i32, %c0_i32_0 : i32, i32
  }
  func.func @transform_3(%arg0: i32) -> (i32, i32) {
    %c0_i32 = arith.constant 0 : i32
    %c0_i32_0 = arith.constant 0 : i32
    %c0_i32_1 = arith.constant 0 : i32
    return %c0_i32, %c0_i32_0 : i32, i32
  }
  func.func @transform_4(%arg0: i32) -> (i32, i32) {
    %c0_i32 = arith.constant 0 : i32
    %c0_i32_0 = arith.constant 0 : i32
    %c0_i32_1 = arith.constant 0 : i32
    return %c0_i32, %c0_i32_0 : i32, i32
  }
  func.func @transform_5(%arg0: i32) -> (i32, i32) {
    %c0_i32 = arith.constant 0 : i32
    %c0_i32_0 = arith.constant 0 : i32
    %c0_i32_1 = arith.constant 0 : i32
    return %c0_i32, %c0_i32_0 : i32, i32
  }
  func.func @transform_6(%arg0: i32) -> (i32, i32, i32) {
    %c0_i32 = arith.constant 0 : i32
    %c0_i32_0 = arith.constant 0 : i32
    %c0_i32_1 = arith.constant 0 : i32
    return %arg0, %c0_i32, %c0_i32_0 : i32, i32, i32
  }
}

</mosaic_0001>

<bundles_post_ra>
// kernel: _lambda_.1
= control target key start
LH: loop header
LB: loop body
LE: loop exit
PB: predicated region body
PF: predicated region fallthrough
CT: control target
= control target key end

     0   :  { %11 = vsyncpa [#allocation5], 0  ;;  %s1605_s0 = inlined_call_operand.vmem [shape: bf16[1,8,16], index: 0, kind: input, shape index: {}]   ;;  %s1606_s1 = inlined_call_operand.vmem [shape: bf16[16,128], index: 1, kind: input, shape index: {}]   ;;  %s1607_s2 = inlined_call_operand.hbm [shape: f32[32,128], index: 2, kind: input, shape index: {}]   ;;  %s1608_s3 = inlined_call_operand.vmem [shape: f32[1,128], index: 3, kind: input, shape index: {}]   ;;  %s1609_s4 = inlined_call_operand.vmem [shape: bf16[32,32], index: 4, kind: input, shape index: {}]   ;;  %s1610_s5 = inlined_call_operand.vmem [shape: f32[1,32], index: 5, kind: input, shape index: {}]   ;;  %s1611_s6 = inlined_call_operand.hbm [shape: f32[1,8,32], index: 6, kind: output, shape index: {}]  }
   0x1   :  { %12 = vsyncpa [#allocation6], 0  ;;  %s1395_s21 = smov [#allocation4]   ;;  %s1347_s25 = scalar_lea.hbm %s1607_s2, 512 }
   0x2   :  { %s22_s22 = sshll.u32 %s1395_s21, 4  ;;  %p1348_p0 = scmp.ne.s32.totalorder %s1607_s2, %s1347_s25  ;;  %s23_s22 = int_to_ptr.vmem [resolvable:$true] %s22_s22 }
   0x3   :  { %p1351_p1 = scmp.lt.u32.totalorder %s1347_s25, %s1607_s2 }
   0x5   :  { %p1353_p2 = pnand %p1351_p1, %p1348_p0 }
   0x7   :  { %1356 = shalt.err (!%p1353_p2)
}
   0x8   :  { %s1357_s30 = scalar_lea.vmem %s23_s22, 512  ;;  %p1362_p4 = scmp.lt.s32.totalorder %s23_s22, %s23_s22 }
   0x9   :  { %p1358_p3 = scmp.ne.s32.totalorder %s23_s22, %s1357_s30  ;;  %p1363_p5 = scmp.lt.s32.totalorder %s1357_s30, %s1357_s30 }
   0xb   :  { %p1364_p6 = por %p1363_p5, %p1362_p4 }
   0xd   :  { %p1365_p7 = pnand %p1364_p6, %p1358_p3 }
   0xf   :  { %1368 = shalt.err (!%p1365_p7)
}
  0x10   :  { %s1396_s7 = smov 128   ;;  %s1397_s8 = smov 8  }
  0x11   :  { %28 = dma.hbm_to_vmem [thread:$0]  %s1607_s2, 512, %s23_s22, [#allocation5], %s1396_s7, %s1396_s7, %s1397_s8  }
  0x12   :  { %1391 = dma.done.wait [#allocation5], 512  }
  0x13   :  { %1392 = vsyncadd [#allocation5], 4294966784  ;;  %v1398_v0 = vmov 0.0   ;;  %v1399_v1 = vmov 0.0|0.0   ;;  %vm43_vm0 = vcmask 253952   ;;  %vm1400_vm1 = vmmov 0  }
  0x14   :  { %1120 = vmatprep.subr.bf16.mxu0 %v1398_v0  ;;  %1222 = vmatprep.subr.bf16.mxu1 %v1399_v1  ;;  %44 = vst.msk [vmem:[#allocation2] sm:$0x1] %vm43_vm0, %v1398_v0  ;;  %45 = vst.msk [vmem:[#allocation3] sm:$0x1] %vm43_vm0, %v1398_v0  ;;  %v1280_v2 = vld [vmem:[%s1606_s1] sm:$0xff]   ;;  %v47_v4 = vld [vmem:[#allocation4 + $0x8] sm:$0xff] }
  0x15   :  { %1122 = vmatprep.mubr.msk.bf16.mxu0 %vm1400_vm1, %v1398_v0  ;;  %1134 = vmatprep.mubr.msk.f32.mxu1 %vm1400_vm1, %v1398_v0  ;;  %v46_v3 = vld [vmem:[#allocation4] sm:$0xff]  ;;  %vm66_vm2 = vcmask 130048   ;;  %v48_v7 = vld [vmem:[#allocation4 + $0x10] sm:$0xff]  ;;  %v49_v8 = vld [vmem:[#allocation4 + $0x18] sm:$0xff]  ;;  %vm112_vm3 = vcmask 261120   ;;  %s1401_s14 = smov 32  }
  0x16   :  { %1121 = vmatpush3.bf16.msra.mxu0 %v1280_v2  ;;  %v1465_v5 = vpack.c.bf16 %v47_v4, %v46_v3  ;;  %v51_v6 = vld [vmem:[%s1605_s0] sm:$0xf]  ;;  %v1472_v9 = vpack.c.bf16 %v49_v8, %v48_v7  ;;  %vm951_vm4 = vcmask 1040384   ;;  %vm953_vm5 = vcmask 1041408   ;;  %s1403_s19 = smov 96   ;;  %s1404_s21 = smov [#allocation7]  }
  0x17   :  { %1228 = vmatprep.subr.bf16.mxu0 %v1399_v1  ;;  %v1051_v11 = vld [vmem:[%s1608_s3] ss:$0 sm:$0xff]  ;;  %s1402_s3 = smov 64   ;;  %vm955_vm6 = vcmask 1042432   ;;  %vm957_vm7 = vcmask 1043456   ;;  %vm959_vm8 = vcmask 1044480  }
  0x18   :  { %1224 = vmatpush3.bf16.msra.mxu1 %v1465_v5  ;;  %vm961_vm9 = vcmask 1045504   ;;  %vm963_vm10 = vcmask 1046528   ;;  %s1042_s22 = sshll.u32 %s1404_s21, 4  ;;  %s1043_s22 = int_to_ptr.vmem [resolvable:$true] %s1042_s22 }
  0x19   :  { %1123 = vmatmul.mubr.msk.bf16.vlgmr.msra.gmra.mrb[0].mxu0 %vm66_vm2, %v51_v6  ;;  %1225 = vmatprep.subr.bf16.mxu1 %v1399_v1  ;;  %s1369_s23 = scalar_lea.vmem %s1043_s22, 128  ;;  %p1374_p9 = scmp.lt.s32.totalorder %s1043_s22, %s1043_s22 }
  0x1a   :  { %1230 = vmatpush3.bf16.msra.mxu0 %v1465_v5  ;;  %1145 = vmatprep.mubr.msk.f32.mxu0 %vm1400_vm1, %v1398_v0  ;;  %p1370_p8 = scmp.ne.s32.totalorder %s1043_s22, %s1369_s23  ;;  %p1375_p10 = scmp.lt.s32.totalorder %s1369_s23, %s1369_s23 }
  0x1b   :  { %1231 = vmatprep.subr.bf16.mxu0 %v1399_v1  ;;  %v110_v10 = vld [vmem:[#allocation2] sm:$0x1]  ;;  %v1056_v21 = vld [vmem:[#allocation3] ss:$0 sm:$0xff] }
  0x1c   :  { %1227 = vmatpush3.bf16.msra.mxu1 %v1472_v9  ;;  %p1376_p11 = por %p1375_p10, %p1374_p9 }
  0x1d   :  { %1234 = vmatprep.subr.bf16.mxu1 %v1399_v1 }
  0x1e   :  { %1233 = vmatpush3.bf16.msra.mxu0 %v1472_v9  ;;  %p1377_p12 = pnand %p1376_p11, %p1370_p8 }
  0x1f   :  { %1135 = vmatmul.mubr.msk.f32.vlgmr.msra.gmra.mrb[0].mxu1 %vm112_vm3, %v110_v10  ;;  %1240 = vmatprep.subr.bf16.mxu0 %v1399_v1 }
  0x20   :  { %1236 = vmatpush3.bf16.msra.mxu1 %v1465_v5  ;;  %1156 = vmatprep.mubr.msk.f32.mxu1 %vm1400_vm1, %v1398_v0 }
  0x21   :  { %1237 = vmatprep.subr.bf16.mxu1 %v1399_v1 }
  0x24   :  { %1239 = vmatpush3.bf16.msra.mxu1 %v1472_v9 }
  0x25   :  { %1246 = vmatprep.subr.bf16.mxu1 %v1399_v1 }
  0xec   :  { %v104_v12 = vpop.f32.mrb[0].mxu0 }
  0xed   :  { %v1124_v13 = vpop.f32.mrb[1].mxu0  ;;  %v1493_v15 = vadd.f32 %v1051_v11, %v104_v12 }
  0xee   :  { %v107_v14 = vpop.f32.mrb[2].mxu0 }
  0xef   :  { %v1125_v16 = vpop.f32.mrb[3].mxu0  ;;  %v222_v36 = vrot.slane %v1493_v15, 1  ;;  %v323_v54 = vrot.slane %v1493_v15, 2 }
  0xf2   :  { %v182_v17 = vpop.f32.mrb[0].mxu1 }
  0xf3   :  { %v183_v18 = vadd.f32 %v182_v17, %v1493_v15  ;;  %v1136_v19 = vpop.f32.mrb[1].mxu1  ;;  %v424_v17 = vrot.slane %v1493_v15, 3 }
  0xf5   :  { %1283 = vtanh.f32 %v183_v18  ;;  %v1055_v22 = vmul.f32 -1.442695, %v183_v18 }
  0xf7   :  { %1285 = vpow2.f32 %v1055_v22 }
  0xff   :  { %v1284_v20 = vpop.eup %1283 }
 0x100   :  { %203 = vrot.lane.b32.xlu0 %v1284_v20, %s1401_s14 }
 0x101   :  { %v1286_v23 = vpop.eup %1285 }
 0x102   :  { %v189_v24 = vadd.f32 1.0, %v1286_v23 }
 0x104   :  { %198 = vrot.lane.b32.xlu0 %v1056_v21, %s1401_s14  ;;  %1287 = vrcp.f32 %v189_v24 }
 0x10e   :  { %v1288_v25 = vpop.eup %1287 }
 0x172   :  { %v204_v26 = vpop.permute.xlu0 %203 }
 0x173   :  { %v206_v27 = vmul.f32 %v1288_v25, %v204_v26 }
 0x175   :  { %208 = vrot.lane.b32.xlu1 %v206_v27, %s1401_s14 }
 0x176   :  { %v199_v28 = vpop.permute.xlu0 %198 }
 0x177   :  { %v201_v29 = vmul.f32 %v1288_v25, %v199_v28 }
 0x1e7   :  { %v209_v30 = vpop.permute.xlu1 %208 }
 0x1e8   :  { %v211_v31 = vadd.f32 %v209_v30, %v201_v29 }
 0x1ea   :  { %1289 = vtanh.f32 %v211_v31 }
 0x1f4   :  { %v1290_v32 = vpop.eup %1289 }
 0x1f5   :  { %214 = vrot.lane.b32.xlu1 %v1290_v32, %s1401_s14 }
 0x267   :  { %v215_v33 = vpop.permute.xlu1 %214 }
 0x268   :  { %v1500_v34 = vmul.f32 %v1288_v25, %v215_v33 }
 0x26a   :  { %219 = vrot.lane.b32.xlu0 %v1500_v34, %s1402_s3 }
 0x2dc   :  { %v220_v35 = vpop.permute.xlu0 %219 }
 0x2dd   :  { %1146 = vmatmul.mubr.msk.f32.vlgmr.msra.gmra.mrb[4].mxu0 %vm112_vm3, %v220_v35 }
 0x2de   :  { %1242 = vmatpush3.bf16.msra.mxu0 %v1465_v5  ;;  %1167 = vmatprep.mubr.msk.f32.mxu0 %vm1400_vm1, %v1398_v0 }
 0x2df   :  { %1243 = vmatprep.subr.bf16.mxu0 %v1399_v1 }
 0x2e2   :  { %1245 = vmatpush3.bf16.msra.mxu0 %v1472_v9 }
 0x2e3   :  { %1252 = vmatprep.subr.bf16.mxu0 %v1399_v1 }
 0x3b0   :  { %v292_v37 = vpop.f32.mrb[4].mxu0 }
 0x3b1   :  { %v293_v38 = vadd.f32 %v292_v37, %v222_v36  ;;  %v1147_v39 = vpop.f32.mrb[5].mxu0  ;;  %v525_v37 = vrot.slane %v1493_v15, 4 }
 0x3b3   :  { %1291 = vtanh.f32 %v293_v38  ;;  %v1058_v41 = vmul.f32 -1.442695, %v293_v38 }
 0x3b5   :  { %1293 = vpow2.f32 %v1058_v41 }
 0x3bd   :  { %v1292_v40 = vpop.eup %1291 }
 0x3be   :  { %305 = vrot.lane.b32.xlu1 %v1292_v40, %s1401_s14 }
 0x3bf   :  { %v1294_v42 = vpop.eup %1293 }
 0x3c0   :  { %v299_v43 = vadd.f32 1.0, %v1294_v42 }
 0x3c2   :  { %1295 = vrcp.f32 %v299_v43 }
 0x3cc   :  { %v1296_v44 = vpop.eup %1295 }
 0x3cd   :  { %v303_v47 = vmul.f32 %v1296_v44, %v211_v31 }
 0x430   :  { %v306_v45 = vpop.permute.xlu1 %305 }
 0x431   :  { %v308_v46 = vmul.f32 %v1296_v44, %v306_v45 }
 0x433   :  { %310 = vrot.lane.b32.xlu0 %v308_v46, %s1401_s14 }
 0x4a5   :  { %v311_v48 = vpop.permute.xlu0 %310 }
 0x4a6   :  { %v313_v49 = vadd.f32 %v311_v48, %v303_v47 }
 0x4a8   :  { %1297 = vtanh.f32 %v313_v49 }
 0x4b2   :  { %v1298_v50 = vpop.eup %1297 }
 0x4b3   :  { %316 = vrot.lane.b32.xlu1 %v1298_v50, %s1401_s14 }
 0x525   :  { %v317_v51 = vpop.permute.xlu1 %316 }
 0x526   :  { %v319_v52 = vmul.f32 %v1296_v44, %v317_v51 }
 0x528   :  { %321 = vrot.lane.b32.xlu0 %v319_v52, %s1402_s3  ;;  %v937_v8 = vrot.slane %v319_v52, 7 }
 0x52a   :  { %v952_v13 = vsel %vm951_vm4, %v1500_v34, %v937_v8 }
 0x59a   :  { %v322_v53 = vpop.permute.xlu0 %321 }
 0x59b   :  { %1157 = vmatmul.mubr.msk.f32.vlgmr.msra.gmra.mrb[2].mxu1 %vm112_vm3, %v322_v53 }
 0x59c   :  { %1248 = vmatpush3.bf16.msra.mxu1 %v1465_v5  ;;  %1178 = vmatprep.mubr.msk.f32.mxu1 %vm1400_vm1, %v1398_v0 }
 0x59d   :  { %1249 = vmatprep.subr.bf16.mxu1 %v1399_v1 }
 0x5a0   :  { %1251 = vmatpush3.bf16.msra.mxu1 %v1472_v9 }
 0x5a1   :  { %1258 = vmatprep.subr.bf16.mxu1 %v1399_v1 }
 0x66e   :  { %v393_v55 = vpop.f32.mrb[2].mxu1 }
 0x66f   :  { %v394_v56 = vadd.f32 %v393_v55, %v323_v54  ;;  %v1158_v57 = vpop.f32.mrb[3].mxu1 }
 0x670   :  { %v626_v57 = vrot.slane %v1493_v15, 5 }
 0x671   :  { %1299 = vtanh.f32 %v394_v56  ;;  %v1060_v59 = vmul.f32 -1.442695, %v394_v56 }
 0x673   :  { %1301 = vpow2.f32 %v1060_v59 }
 0x67b   :  { %v1300_v58 = vpop.eup %1299 }
 0x67c   :  { %406 = vrot.lane.b32.xlu1 %v1300_v58, %s1401_s14 }
 0x67d   :  { %v1302_v60 = vpop.eup %1301 }
 0x67e   :  { %v400_v61 = vadd.f32 1.0, %v1302_v60 }
 0x680   :  { %1303 = vrcp.f32 %v400_v61 }
 0x68a   :  { %v1304_v62 = vpop.eup %1303 }
 0x68b   :  { %v404_v3 = vmul.f32 %v1304_v62, %v313_v49 }
 0x6ee   :  { %v407_v63 = vpop.permute.xlu1 %406 }
 0x6ef   :  { %v409_v2 = vmul.f32 %v1304_v62, %v407_v63 }
 0x6f1   :  { %411 = vrot.lane.b32.xlu0 %v409_v2, %s1401_s14 }
 0x763   :  { %v412_v4 = vpop.permute.xlu0 %411 }
 0x764   :  { %v414_v6 = vadd.f32 %v412_v4, %v404_v3 }
 0x766   :  { %1305 = vtanh.f32 %v414_v6 }
 0x770   :  { %v1306_v7 = vpop.eup %1305 }
 0x771   :  { %417 = vrot.lane.b32.xlu1 %v1306_v7, %s1401_s14 }
 0x7e3   :  { %v418_v10 = vpop.permute.xlu1 %417 }
 0x7e4   :  { %v420_v11 = vmul.f32 %v1304_v62, %v418_v10 }
 0x7e6   :  { %v939_v12 = vrot.slane %v420_v11, 6  ;;  %422 = vrot.lane.b32.xlu0 %v420_v11, %s1402_s3 }
 0x7e8   :  { %v954_v14 = vsel %vm953_vm5, %v952_v13, %v939_v12 }
 0x858   :  { %v423_v16 = vpop.permute.xlu0 %422 }
 0x859   :  { %1168 = vmatmul.mubr.msk.f32.vlgmr.msra.gmra.mrb[6].mxu0 %vm112_vm3, %v423_v16 }
 0x85a   :  { %1254 = vmatpush3.bf16.msra.mxu0 %v1465_v5  ;;  %1189 = vmatprep.mubr.msk.f32.mxu0 %vm1400_vm1, %v1398_v0 }
 0x85b   :  { %1255 = vmatprep.subr.bf16.mxu0 %v1399_v1 }
 0x85e   :  { %1257 = vmatpush3.bf16.msra.mxu0 %v1472_v9 }
 0x85f   :  { %1264 = vmatprep.subr.bf16.mxu0 %v1399_v1 }
 0x92c   :  { %v494_v18 = vpop.f32.mrb[6].mxu0 }
 0x92d   :  { %v495_v19 = vadd.f32 %v494_v18, %v424_v17  ;;  %v1169_v20 = vpop.f32.mrb[7].mxu0 }
 0x92f   :  { %1307 = vtanh.f32 %v495_v19  ;;  %v1062_v22 = vmul.f32 -1.442695, %v495_v19 }
 0x931   :  { %1309 = vpow2.f32 %v1062_v22 }
 0x939   :  { %v1308_v21 = vpop.eup %1307 }
 0x93a   :  { %507 = vrot.lane.b32.xlu1 %v1308_v21, %s1401_s14 }
 0x93b   :  { %v1310_v23 = vpop.eup %1309 }
 0x93c   :  { %v501_v24 = vadd.f32 1.0, %v1310_v23 }
 0x93e   :  { %1311 = vrcp.f32 %v501_v24 }
 0x948   :  { %v1312_v25 = vpop.eup %1311 }
 0x949   :  { %v505_v28 = vmul.f32 %v1312_v25, %v414_v6 }
 0x9ac   :  { %v508_v26 = vpop.permute.xlu1 %507 }
 0x9ad   :  { %v510_v27 = vmul.f32 %v1312_v25, %v508_v26 }
 0x9af   :  { %512 = vrot.lane.b32.xlu0 %v510_v27, %s1401_s14 }
 0xa21   :  { %v513_v29 = vpop.permute.xlu0 %512 }
 0xa22   :  { %v515_v30 = vadd.f32 %v513_v29, %v505_v28 }
 0xa24   :  { %1313 = vtanh.f32 %v515_v30 }
 0xa2e   :  { %v1314_v31 = vpop.eup %1313 }
 0xa2f   :  { %518 = vrot.lane.b32.xlu1 %v1314_v31, %s1401_s14 }
 0xaa1   :  { %v519_v32 = vpop.permute.xlu1 %518 }
 0xaa2   :  { %v521_v33 = vmul.f32 %v1312_v25, %v519_v32 }
 0xaa4   :  { %v941_v34 = vrot.slane %v521_v33, 5  ;;  %523 = vrot.lane.b32.xlu0 %v521_v33, %s1402_s3 }
 0xaa6   :  { %v956_v35 = vsel %vm955_vm6, %v954_v14, %v941_v34  ;;  %v727_v14 = vrot.slane %v1493_v15, 6 }
 0xb16   :  { %v524_v36 = vpop.permute.xlu0 %523 }
 0xb17   :  { %1179 = vmatmul.mubr.msk.f32.vlgmr.msra.gmra.mrb[4].mxu1 %vm112_vm3, %v524_v36 }
 0xb18   :  { %1260 = vmatpush3.bf16.msra.mxu1 %v1465_v5  ;;  %1200 = vmatprep.mubr.msk.f32.mxu1 %vm1400_vm1, %v1398_v0 }
 0xb19   :  { %1261 = vmatprep.subr.bf16.mxu1 %v1399_v1 }
 0xb1c   :  { %1263 = vmatpush3.bf16.msra.mxu1 %v1472_v9 }
 0xb1d   :  { %1214 = vmatprep.subr.bf16.mxu1 %v1398_v0 }
 0xbea   :  { %v595_v38 = vpop.f32.mrb[4].mxu1 }
 0xbeb   :  { %v596_v39 = vadd.f32 %v595_v38, %v525_v37  ;;  %v1180_v40 = vpop.f32.mrb[5].mxu1 }
 0xbed   :  { %1315 = vtanh.f32 %v596_v39  ;;  %v1064_v42 = vmul.f32 -1.442695, %v596_v39 }
 0xbef   :  { %1317 = vpow2.f32 %v1064_v42 }
 0xbf7   :  { %v1316_v41 = vpop.eup %1315 }
 0xbf8   :  { %608 = vrot.lane.b32.xlu1 %v1316_v41, %s1401_s14 }
 0xbf9   :  { %v1318_v43 = vpop.eup %1317 }
 0xbfa   :  { %v602_v44 = vadd.f32 1.0, %v1318_v43 }
 0xbfc   :  { %1319 = vrcp.f32 %v602_v44 }
 0xc06   :  { %v1320_v45 = vpop.eup %1319 }
 0xc07   :  { %v606_v48 = vmul.f32 %v1320_v45, %v515_v30 }
 0xc6a   :  { %v609_v46 = vpop.permute.xlu1 %608 }
 0xc6b   :  { %v611_v47 = vmul.f32 %v1320_v45, %v609_v46 }
 0xc6d   :  { %613 = vrot.lane.b32.xlu0 %v611_v47, %s1401_s14 }
 0xcdf   :  { %v614_v49 = vpop.permute.xlu0 %613 }
 0xce0   :  { %v616_v50 = vadd.f32 %v614_v49, %v606_v48  ;;  %v1281_v48 = vld [vmem:[%s1609_s4] sm:$0xff]  }
 0xce2   :  { %1321 = vtanh.f32 %v616_v50 }
 0xcec   :  { %v1322_v51 = vpop.eup %1321 }
 0xced   :  { %619 = vrot.lane.b32.xlu1 %v1322_v51, %s1401_s14 }
 0xd5f   :  { %v620_v52 = vpop.permute.xlu1 %619 }
 0xd60   :  { %v622_v53 = vmul.f32 %v1320_v45, %v620_v52 }
 0xd62   :  { %v943_v54 = vrot.slane %v622_v53, 4  ;;  %624 = vrot.lane.b32.xlu0 %v622_v53, %s1402_s3 }
 0xd64   :  { %v958_v55 = vsel %vm957_vm7, %v956_v35, %v943_v54  ;;  %v828_v35 = vrot.slane %v1493_v15, 7 }
 0xdd4   :  { %v625_v56 = vpop.permute.xlu0 %624 }
 0xdd5   :  { %1190 = vmatmul.mubr.msk.f32.vlgmr.msra.gmra.mrb[8].mxu0 %vm112_vm3, %v625_v56 }
 0xdd6   :  { %1266 = vmatpush3.bf16.msra.mxu0 %v1465_v5  ;;  %1211 = vmatprep.mubr.msk.f32.mxu0 %vm1400_vm1, %v1398_v0 }
 0xdd7   :  { %1267 = vmatprep.subr.bf16.mxu0 %v1399_v1 }
 0xdda   :  { %1269 = vmatpush3.bf16.msra.mxu0 %v1472_v9 }
 0xea8   :  { %v696_v58 = vpop.f32.mrb[8].mxu0 }
 0xea9   :  { %v697_v59 = vadd.f32 %v696_v58, %v626_v57  ;;  %v1191_v60 = vpop.f32.mrb[9].mxu0  ;;  %v1071_v58 = vld [vmem:[%s1610_s5] ss:$0 sm:$0xff] }
 0xeab   :  { %1323 = vtanh.f32 %v697_v59  ;;  %v1066_v62 = vmul.f32 -1.442695, %v697_v59 }
 0xead   :  { %1325 = vpow2.f32 %v1066_v62 }
 0xeb5   :  { %v1324_v61 = vpop.eup %1323 }
 0xeb6   :  { %709 = vrot.lane.b32.xlu1 %v1324_v61, %s1401_s14 }
 0xeb7   :  { %v1326_v63 = vpop.eup %1325 }
 0xeb8   :  { %v703_v5 = vadd.f32 1.0, %v1326_v63 }
 0xeba   :  { %1327 = vrcp.f32 %v703_v5 }
 0xec4   :  { %v1328_v2 = vpop.eup %1327 }
 0xec5   :  { %v707_v1 = vmul.f32 %v1328_v2, %v616_v50  ;;  %v1282_v50 = vld [vmem:[%s1609_s4 + $0x8] sm:$0xff]  }
 0xf28   :  { %v710_v3 = vpop.permute.xlu1 %709 }
 0xf29   :  { %v712_v4 = vmul.f32 %v1328_v2, %v710_v3 }
 0xf2b   :  { %714 = vrot.lane.b32.xlu0 %v712_v4, %s1401_s14 }
 0xf9d   :  { %v715_v9 = vpop.permute.xlu0 %714 }
 0xf9e   :  { %v717_v6 = vadd.f32 %v715_v9, %v707_v1 }
 0xfa0   :  { %1329 = vtanh.f32 %v717_v6 }
 0xfaa   :  { %v1330_v7 = vpop.eup %1329 }
 0xfab   :  { %720 = vrot.lane.b32.xlu1 %v1330_v7, %s1401_s14 }
0x101d   :  { %v721_v8 = vpop.permute.xlu1 %720 }
0x101e   :  { %v723_v10 = vmul.f32 %v1328_v2, %v721_v8 }
0x1020   :  { %v945_v11 = vrot.slane %v723_v10, 3  ;;  %725 = vrot.lane.b32.xlu0 %v723_v10, %s1402_s3 }
0x1022   :  { %v960_v12 = vsel %vm959_vm8, %v958_v55, %v945_v11 }
0x1092   :  { %v726_v13 = vpop.permute.xlu0 %725 }
0x1093   :  { %1201 = vmatmul.mubr.msk.f32.vlgmr.msra.gmra.mrb[6].mxu1 %vm112_vm3, %v726_v13 }
0x1094   :  { %1218 = vmatprep.mubr.msk.bf16.mxu1 %vm1400_vm1, %v1398_v0  ;;  %1215 = vmatpush3.bf16.msra.mxu1 %v1281_v48 }
0x1095   :  { %1216 = vmatprep.subr.bf16.mxu1 %v1398_v0 }
0x1098   :  { %1217 = vmatpush3.bf16.msra.mxu1 %v1282_v50 }
0x1166   :  { %v797_v16 = vpop.f32.mrb[6].mxu1 }
0x1167   :  { %v798_v17 = vadd.f32 %v797_v16, %v727_v14  ;;  %v1202_v18 = vpop.f32.mrb[7].mxu1 }
0x1169   :  { %1331 = vtanh.f32 %v798_v17  ;;  %v1068_v20 = vmul.f32 -1.442695, %v798_v17 }
0x116b   :  { %1333 = vpow2.f32 %v1068_v20 }
0x1173   :  { %v1332_v19 = vpop.eup %1331 }
0x1174   :  { %810 = vrot.lane.b32.xlu1 %v1332_v19, %s1401_s14 }
0x1175   :  { %v1334_v21 = vpop.eup %1333 }
0x1176   :  { %v804_v22 = vadd.f32 1.0, %v1334_v21 }
0x1178   :  { %1335 = vrcp.f32 %v804_v22 }
0x1182   :  { %v1336_v23 = vpop.eup %1335 }
0x1183   :  { %v808_v26 = vmul.f32 %v1336_v23, %v717_v6 }
0x11e6   :  { %v811_v24 = vpop.permute.xlu1 %810 }
0x11e7   :  { %v813_v25 = vmul.f32 %v1336_v23, %v811_v24 }
0x11e9   :  { %815 = vrot.lane.b32.xlu0 %v813_v25, %s1401_s14 }
0x125b   :  { %v816_v27 = vpop.permute.xlu0 %815 }
0x125c   :  { %v818_v28 = vadd.f32 %v816_v27, %v808_v26 }
0x125e   :  { %1337 = vtanh.f32 %v818_v28 }
0x1268   :  { %v1338_v29 = vpop.eup %1337 }
0x1269   :  { %821 = vrot.lane.b32.xlu1 %v1338_v29, %s1401_s14 }
0x12db   :  { %v822_v30 = vpop.permute.xlu1 %821 }
0x12dc   :  { %v824_v31 = vmul.f32 %v1336_v23, %v822_v30 }
0x12de   :  { %v947_v32 = vrot.slane %v824_v31, 2  ;;  %826 = vrot.lane.b32.xlu0 %v824_v31, %s1402_s3 }
0x12e0   :  { %v962_v33 = vsel %vm961_vm9, %v960_v12, %v947_v32 }
0x1350   :  { %v827_v34 = vpop.permute.xlu0 %826 }
0x1351   :  { %1212 = vmatmul.mubr.msk.f32.vlgmr.msra.gmra.mrb[10].mxu0 %vm112_vm3, %v827_v34 }
0x1424   :  { %v898_v36 = vpop.f32.mrb[10].mxu0 }
0x1425   :  { %v899_v37 = vadd.f32 %v898_v36, %v828_v35  ;;  %v1213_v38 = vpop.f32.mrb[11].mxu0 }
0x1427   :  { %1339 = vtanh.f32 %v899_v37  ;;  %v1070_v40 = vmul.f32 -1.442695, %v899_v37 }
0x1429   :  { %1341 = vpow2.f32 %v1070_v40 }
0x1431   :  { %v1340_v39 = vpop.eup %1339 }
0x1432   :  { %911 = vrot.lane.b32.xlu1 %v1340_v39, %s1401_s14 }
0x1433   :  { %v1342_v41 = vpop.eup %1341 }
0x1434   :  { %v905_v42 = vadd.f32 1.0, %v1342_v41 }
0x1436   :  { %1343 = vrcp.f32 %v905_v42 }
0x1440   :  { %v1344_v43 = vpop.eup %1343 }
0x1441   :  { %v909_v46 = vmul.f32 %v1344_v43, %v818_v28 }
0x14a4   :  { %v912_v44 = vpop.permute.xlu1 %911 }
0x14a5   :  { %v914_v45 = vmul.f32 %v1344_v43, %v912_v44 }
0x14a7   :  { %916 = vrot.lane.b32.xlu0 %v914_v45, %s1401_s14 }
0x1519   :  { %v917_v47 = vpop.permute.xlu0 %916 }
0x151a   :  { %v919_v15 = vadd.f32 %v917_v47, %v909_v46 }
0x151c   :  { %1345 = vtanh.f32 %v919_v15 }
0x1526   :  { %v1346_v49 = vpop.eup %1345 }
0x1527   :  { %922 = vrot.lane.b32.xlu1 %v1346_v49, %s1401_s14 }
0x1599   :  { %v923_v51 = vpop.permute.xlu1 %922 }
0x159a   :  { %v925_v52 = vmul.f32 %v1344_v43, %v923_v51 }
0x159c   :  { %v949_v53 = vrot.slane %v925_v52, 1  ;;  %927 = vrot.lane.b32.xlu1 %v925_v52, %s1402_s3 }
0x159e   :  { %v964_v54 = vsel %vm963_vm10, %v962_v33, %v949_v53 }
0x159f   :  { %v965_v55 = vpack.c.bf16 %v964_v54, %v964_v54 }
0x15a1   :  { %978 = vrot.lane.b32.xlu0 %v965_v55, %s1402_s3 }
0x15a5   :  { %933 = vrot.lane.b32.xlu0 %v919_v15, %s1403_s19 }
0x160e   :  { %v928_v56 = vpop.permute.xlu1 %927 }
0x160f   :  { %931 = vst.msk [vmem:[#allocation2] sm:$0x1] %vm43_vm0, %v928_v56 }
0x1613   :  { %v979_v0 = vpop.permute.xlu0 %978 }
0x1614   :  { %1219 = vmatmul.mubr.msk.bf16.vlgmr.msra.gmra.mrb[8].mxu1 %vm112_vm3, %v979_v0 }
0x1617   :  { %v934_v57 = vpop.permute.xlu0 %933 }
0x1618   :  { %936 = vst.msk [vmem:[#allocation3] sm:$0x1] %vm43_vm0, %v934_v57 }
0x16e7   :  { %v1029_v59 = vpop.f32.mrb[8].mxu1 }
0x16e8   :  { %v1030_v60 = vadd.f32 %v1071_v58, %v1029_v59  ;;  %v1220_v61 = vpop.f32.mrb[9].mxu1 }
0x16e9   :  { %v1032_v62 = vpop.f32.mrb[10].mxu1 }
0x16ea   :  { %1035 = vst.msk [vmem:[#allocation7] sm:$0xff] %vm112_vm3, %v1030_v60  ;;  %v1221_v63 = vpop.f32.mrb[11].mxu1 }
0x16eb   :  { %1380 = shalt.err (!%p1377_p12)
}
0x16ec   :  { %s1381_s5 = scalar_lea.hbm %s1611_s6, 128 }
0x16ed   :  { %p1382_p13 = scmp.ne.s32.totalorder %s1611_s6, %s1381_s5  ;;  %p1385_p0 = scmp.lt.u32.totalorder %s1381_s5, %s1611_s6 }
0x16ef   :  { %p1387_p1 = pnand %p1385_p0, %p1382_p13 }
0x16f1   :  { %1390 = shalt.err (!%p1387_p1)
}
0x16f2   :  { %1045 = dma.vmem_to_hbm [thread:$0]  %s1043_s22, 128, %s1611_s6, [#allocation6]  }
0x16f3   :  { %1393 = dma.done.wait [#allocation6], 128  }
0x16f4   :  { %1394 = vsyncadd [#allocation6], 4294967168 }
0x16f5   :  { %1049 = vsyncpa [#allocation5], 1 }
0x16f6   :  { %1050 = vsyncpa [#allocation6], 1 }

</bundles_post_ra>
